<compile_context>
chip_gen: v5e
topology: v5e:2x2
jax: 0.10.0
libtpu: 0.0.40
codegen_flags: <defaults>
</compile_context>

<pallas_src>
import jax
import jax.numpy as jnp
from jax.experimental import pallas as pl
from jax.experimental.pallas import tpu as pltpu

_MIN = 1e-05
_MAX = 1e06
_LANES = 128
# ~2 MiB per block (see header comment).
_TARGET_BLOCK_BYTES = 2 * 1024 * 1024


def _meanact_kernel(x_ref, o_ref):
    # Compute in f32 for parity with the float32 torch reference even when the
    # input is a low-precision dtype; exp -> EUP, clip -> VPU.
    x = x_ref[...].astype(jnp.float32)
    y = jnp.clip(jnp.exp(x), _MIN, _MAX)
    o_ref[...] = y.astype(o_ref.dtype)


def _round_up(a: int, b: int) -> int:
    return ((a + b - 1) // b) * b


def mean_act(x: jax.Array) -> jax.Array:
    """clamp(exp(x), 1e-5, 1e6), computed in a Pallas TPU kernel."""
    orig_shape = x.shape
    orig_dtype = x.dtype
    n = x.size
    if n == 0:
        return x
    itemsize = jnp.dtype(orig_dtype).itemsize

    # Common case: x.size divisible by 128 -> reshape directly, no pad and no
    # output slice (each would add a full extra HBM copy outside the kernel).
    padded = (n % _LANES) != 0
    if padded:
        n_pad = _round_up(n, _LANES)          # pad at most 127 elements
        x_flat = jnp.pad(jnp.ravel(x), (0, n_pad - n))
    else:
        n_pad = n
        x_flat = jnp.ravel(x)
    rows = n_pad // _LANES
    x2d = x_flat.reshape(rows, _LANES)

    # Row-tile selection:
    #  - ~2 MiB blocks (target_rows), multiple of 8 sublanes,
    #  - never larger than needed for the input,
    #  - keep >=2 grid steps when the input allows it (dual-TC v7x megacore).
    target_rows = _round_up(max(8, _TARGET_BLOCK_BYTES // (_LANES * itemsize)), 8)
    half_rows = max(8, _round_up(pl.cdiv(rows, 2), 8))
    tile_rows = min(target_rows, half_rows)

    grid = (pl.cdiv(rows, tile_rows),)  # partial last block is masked by Pallas

    out2d = pl.pallas_call(
        _meanact_kernel,
        out_shape=jax.ShapeDtypeStruct((rows, _LANES), orig_dtype),
        grid_spec=pltpu.PrefetchScalarGridSpec(
            num_scalar_prefetch=0,
            grid=grid,
            in_specs=[pl.BlockSpec((tile_rows, _LANES), lambda i: (i, 0))],
            out_specs=pl.BlockSpec((tile_rows, _LANES), lambda i: (i, 0)),
        ),
        compiler_params=pltpu.CompilerParams(
            dimension_semantics=("parallel",),
        ),
        cost_estimate=pl.CostEstimate(
            flops=0,
            transcendentals=n,
            bytes_accessed=2 * n * itemsize,
        ),
    )(x2d)

    if padded:
        return out2d.reshape(-1)[:n].reshape(orig_shape)
    return out2d.reshape(orig_shape)


if __name__ == "__main__":
    key = jax.random.PRNGKey(0)
    # Shape consistent with a typical NCHW activation the module receives.
    x = jax.random.normal(key, (2, 4, 16, 16), dtype=jnp.float32)

    y = mean_act(x)
    y = jax.block_until_ready(y)

    # reference check
    y_ref = jnp.clip(jnp.exp(x), _MIN, _MAX)
    assert y.shape == x.shape and y.dtype == x.dtype
    assert jnp.allclose(y, y_ref, rtol=1e-6, atol=1e-6)

    # also exercise a non-128-divisible size (padded fallback path)
    x2 = jax.random.normal(jax.random.PRNGKey(1), (3, 5, 7), dtype=jnp.float32)
    y2 = jax.block_until_ready(mean_act(x2))
    assert jnp.allclose(y2, jnp.clip(jnp.exp(x2), _MIN, _MAX), rtol=1e-6, atol=1e-6)

    print("KERNEL_OK")
</pallas_src>

<mosaic_0001>
module attributes {stable_mosaic.version = 11 : i64} {
  func.func @_meanact_kernel(%arg0: i32, %arg1: memref<8x128xf32, #tpu.memory_space<vmem>>, %arg2: memref<8x128xf32, #tpu.memory_space<vmem>>) attributes {dimension_semantics = [#tpu.dimension_semantics<parallel>], iteration_bounds = array<i64: 2>, scalar_prefetch = 0 : i64, scratch_operands = 0 : i64, tpu.core_type = #tpu.core_type<tc>, window_params = [{transform_indices = @transform_0, window_bounds = array<i64: 8, 128>}, {transform_indices = @transform_1, window_bounds = array<i64: 8, 128>}]} {
    %c0 = arith.constant 0 : index
    %c0_0 = arith.constant 0 : index
    %0 = vector.load %arg1[%c0, %c0_0] : memref<8x128xf32, #tpu.memory_space<vmem>>, vector<8x128xf32>
    %1 = math.exp %0 : vector<8x128xf32>
    %cst = arith.constant 9.99999974E-6 : f32
    %cst_1 = arith.constant 1.000000e+06 : f32
    %2 = vector.broadcast %cst : f32 to vector<8x128xf32>
    %3 = arith.maximumf %2, %1 : vector<8x128xf32>
    %4 = vector.broadcast %cst_1 : f32 to vector<8x128xf32>
    %5 = arith.minimumf %4, %3 : vector<8x128xf32>
    %c0_2 = arith.constant 0 : index
    %c0_3 = arith.constant 0 : index
    %6 = vector.load %arg2[%c0_2, %c0_3] : memref<8x128xf32, #tpu.memory_space<vmem>>, vector<8x128xf32>
    tpu.vector_store %arg2[%c0_2, %c0_3], %5 {strides = array<i32>} : memref<8x128xf32, #tpu.memory_space<vmem>>, vector<8x128xf32>,
    return
  }
  func.func @transform_0(%arg0: i32) -> (i32, i32) {
    %c0_i32 = arith.constant 0 : i32
    %c0_i32_0 = arith.constant 0 : i32
    return %arg0, %c0_i32 : i32, i32
  }
  func.func @transform_1(%arg0: i32) -> (i32, i32) {
    %c0_i32 = arith.constant 0 : i32
    %c0_i32_0 = arith.constant 0 : i32
    return %arg0, %c0_i32 : i32, i32
  }
}

</mosaic_0001>

<bundles_post_ra>
// kernel: tpu_custom_call.1
= control target key start
LH: loop header
LB: loop body
LE: loop exit
PB: predicated region body
PF: predicated region fallthrough
CT: control target
= control target key end

     0   :  { %6 = vsyncpa [#allocation3], 0  ;;  %s521_s0 = inlined_call_operand.hbm [shape: f32[16,128], index: 0, kind: input, shape index: {}]   ;;  %s522_s1 = inlined_call_operand.hbm [shape: f32[16,128], index: 1, kind: output, shape index: {}]  }
   0x1   :  { %8 = vsyncpa [#allocation3 + $0x1], 0 }
   0x2   :  { %9 = vsyncpa [#allocation4], 0 }
   0x3   :  { %11 = vsyncpa [#allocation4 + $0x1], 0  ;;  %s394_s6 = smov 0   ;;  %s396_s7 = smov 0  }
   0x4   :  { %s398_s8 = smov 0   ;;  %s400_s9 = smov 0  }
   0x5 LB: > { %s415_s10 = sadd.s32 4294967295, %s382_s9   ;;  %s226_s11 = sadd.s32 4294967294, %s382_s9   ;;  %s382_s9 = sphi %s400_s9, %s532_s9   ;;  %s378_s8 = sphi %s398_s8, %s531_s8   ;;  %s374_s7 = sphi %s396_s7, %s530_s7   ;;  %s370_s6 = sphi %s394_s6, %s529_s6  }
   0x6   : > { %s419_s12 = sadd.s32 1, %s382_s9   ;;  %s24_s13 = sadd.s32 1, %s378_s8 }
   0x7   : > { %s21_s14 = ssub.s32 %s382_s9, %s419_s12  ;;  %p31_p0 = scmp.ne.s32.totalorder %s378_s8, %s374_s7 }
   0x8   : > { %p22_p1 = scmp.eq.s32.totalorder %s21_s14, 0  ;;  %p32_p2 = scmp.eq.s32.totalorder %s382_s9, 0 }
   0x9   : > { %p37_p3 = scmp.ne.s32.totalorder %s374_s7, %s370_s6  ;;  %p38_p4 = scmp.eq.s32.totalorder %s415_s10, 0 }
   0xa   : > { %s431_s15 = scalar_select %p22_p1, %s378_s8, %s24_s13  }
   0xb   : > { %p433_p5 = por %p32_p2, %p31_p0  ;;  %p437_p6 = por %p38_p4, %p37_p3 }
   0xc   : > { %p61_p7 = scmp.eq.s32.totalorder %s415_s10, 1  ;;  %p67_p8 = scmp.eq.s32.totalorder %s226_s11, 1 }
   0xd   : > { %p250_p10 = scmp.lt.s32.totalorder %s382_s9, 2  ;;  %s87_s20 = sand.u32 1, %s378_s8  }
   0xe   : > { %p444_p11 = por %p61_p7, %p31_p0  ;;  %p448_p12 = por %p67_p8, %p37_p3 }
   0xf   : > { %s230_s21 = sshll.u32 %s382_s9, 3  ;;  %s229_s22 = sshll.u32 %s87_s20, 3 }
  0x10   : > { %s95_s25 = scalar_lea.hbm %s521_s0, %s230_s21  ;;  %s91_s27 = scalar_lea.vmem [#allocation2], %s229_s22 }
  0x11   : > { %s97_s26 = sshll.u32 %s95_s25, 4  ;;  %s99_s28 = sshll.u32 %s91_s27, 4  ;;  %s98_s26 = int_to_ptr.hbm [resolvable:$true] %s97_s26  ;;  %s100_s28 = int_to_ptr.vmem [resolvable:$true] %s99_s28 }
  0x12   : > { %p459_p13 = pnand %p250_p10, %p433_p5  ;;  %p231_p0 = scmp.ge.s32.totalorder %s382_s9, 1 }
  0x13   : > { %p104_p1 = scmp.lt.s32.totalorder %s382_s9, 3  ;;  %s88_s30 = scalar_lea.sflag [#allocation3], %s87_s20 }
  0x14   : > { %s286_s2 = sshra.s32 %s98_s26, 4  ;;  %p290_p3 = pneg %p459_p13  ;;  %s287_s2 = int_to_ptr.hbm [resolvable:$true] %s286_s2 }
  0x15   : > { %s288_s3 = scalar_lea.hbm %s287_s2, 8  ;;  %s293_s11 = scalar_lea.hbm %s521_s0, 16 }
  0x16   : > { %p289_p2 = scmp.ne.s32.totalorder %s287_s2, %s288_s3  ;;  %p294_p5 = scmp.lt.s32.totalorder %s287_s2, %s521_s0 }
  0x17   : > { %p295_p8 = scmp.lt.s32.totalorder %s293_s11, %s288_s3 }
  0x18   : > { %p291_p4 = pnand %p290_p3, %p289_p2 }
  0x19   : > { %p296_p10 = por %p295_p8, %p294_p5 }
  0x1a   : > { %p292_p7 = pneg %p291_p4 }
  0x1c   : > { %p297_p9 = pnand %p296_p10, %p292_p7 }
  0x1e   : > { %300 = shalt.err (!%p297_p9)
}
  0x1f   : > { %245 = dma.hbm_to_vmem [thread:$0]  (!%p459_p13), %s98_s26, 128, %s100_s28, %s88_s30  }
  0x20   : > { %p105_p2 = pnand %p231_p0, %p104_p1 }
  0x21   : > { %s480_s16 = sand.u32 (!%p105_p2), 1, %s374_s7  }
  0x22   : > { %108 = sbr.rel (%p105_p2) target bundleno = 57 (0x39), region = 24  ;;  %s232_s20 = sshll.u32 (!%p105_p2), %s480_s16, 3 }
  0x23   : > { %s111_s21 = scalar_lea.sflag (!%p105_p2), [#allocation3], %s480_s16  ;;  %s114_s22 = scalar_lea.vmem (!%p105_p2), [#allocation2], %s232_s20 }
  0x27   : > { %361 = dma.done.wait (%p437_p6), %s111_s21, 128  }
  0x28   : > { %363 = vsyncadd (%p437_p6), %s111_s21, 4294967168  ;;  %v134_v0 = vld [vmem:[%s114_s22] sm:$0xff]  ;;  %s235_s23 = sshll.u32 %s415_s10, 3  ;;  %s133_s27 = scalar_lea.vmem [#allocation5], %s232_s20 }
  0x29   : > { %v135_v1 = vmul.f32 1.442695, %v134_v0  ;;  %s151_s26 = scalar_lea.hbm %s522_s1, %s235_s23  ;;  %s153_s28 = sshll.u32 %s133_s27, 4  ;;  %s154_s28 = int_to_ptr.vmem [resolvable:$true] %s153_s28 }
  0x2a   : > { %s155_s29 = sshll.u32 %s151_s26, 4  ;;  %s141_s17 = scalar_lea.sflag [#allocation4], %s480_s16  ;;  %s156_s29 = int_to_ptr.hbm [resolvable:$true] %s155_s29 }
  0x2b   : > { %284 = vpow2.f32 %v135_v1  ;;  %s330_s30 = sshra.s32 %s156_s29, 4  ;;  %s336_s4 = scalar_lea.hbm %s522_s1, 16  ;;  %s331_s30 = int_to_ptr.hbm [resolvable:$true] %s330_s30 }
  0x2c   : > { %s332_s2 = scalar_lea.hbm %s331_s30, 8  ;;  %p337_p0 = scmp.lt.s32.totalorder %s331_s30, %s522_s1 }
  0x2d   : > { %p333_p6 = scmp.ne.s32.totalorder %s331_s30, %s332_s2  ;;  %p338_p1 = scmp.lt.s32.totalorder %s336_s4, %s332_s2 }
  0x2f   : > { %p334_p9 = pnand %p333_p6, %p444_p11  ;;  %p339_p3 = por %p338_p1, %p337_p0 }
  0x31   : > { %v285_v2 = vpop.eup %284  ;;  %p335_p13 = pneg %p334_p9 }
  0x32   : > { %v137_v3 = vmax.f32 %v285_v2, 1e-05 }
  0x33   : > { %p340_p4 = pnand %p339_p3, %p335_p13 }
  0x34   : > { %v138_v4 = vmin.f32 %v137_v3, 1000000.0 }
  0x36   : > { %139 = vst [vmem:[%s133_s27] sm:$0xff] %v138_v4 }
  0x37   : > { %343 = shalt.err (!%p340_p4)
}
  0x38   : > { %240 = dma.vmem_to_hbm [thread:$0]  (%p444_p11), %s154_s28, 128, %s156_s29, %s141_s17  }
  0x39 PF: > { %s167_s13 = sand.u32 1, %s370_s6   ;;  %p528_p7 = scmp.ge.s32.totalorder %s382_s9, 2 }
  0x3a   : > { %s168_s14 = scalar_lea.sflag [#allocation4], %s167_s13 }
  0x3b   : > { %p247_p5 = pnand %p528_p7, %p448_p12 }
  0x3d   : > { %p248_p8 = pneg %p247_p5 }
  0x3f   : > { %365 = dma.done.wait (%p248_p8), %s168_s14, 128  }
  0x40   : > { %367 = vsyncadd (%p248_p8), %s168_s14, 4294967168  ;;  %p14_p10 = scmp.ge.s32.totalorder %s419_s12, 4   ;;  %s529_s6 = smov %s374_s7 }
  0x41   : > { %s530_s7 = smov %s378_s8  ;;  %s531_s8 = smov %s431_s15 }
  0x42   : > { %s532_s9 = smov %s419_s12  ;;  %16 = sbr.rel (!%p14_p10) target bundleno = 5 (0x5), region = 69 }
  0x47   :  { %174 = vsyncpa [#allocation3], 1 }
  0x48   :  { %176 = vsyncpa [#allocation3 + $0x1], 1 }
  0x49   :  { %177 = vsyncpa [#allocation4], 1 }
  0x4a   :  { %179 = vsyncpa [#allocation4 + $0x1], 1 }

</bundles_post_ra>
